<compile_context>
chip_gen: v7x
topology: tpu7x:2x2x1
jax: 0.10.0
libtpu: 0.0.40
codegen_flags: <defaults>
</compile_context>

<pallas_src>
import functools

import jax
import jax.numpy as jnp
from jax import lax
from jax.experimental import pallas as pl
from jax.experimental.pallas import tpu as pltpu

_MIB = 1024 * 1024


def _sigmoid(x_f32):
    # sigmoid(x) = 0.5 * (1 + tanh(x/2)): a single EUP transcendental (tanh);
    # the mul/add ride the 4-wide VPU, which has slack next to the MXU.
    return 0.5 * (1.0 + jnp.tanh(0.5 * x_f32))


# ------------------------------------------------------------------ kernels --

def _resident_kernel(z_ref, out_ref, *, tm):
    """Whole z resident in VMEM; grid walks row blocks of the output.

    out[i*tm:(i+1)*tm, :] = sigmoid(z[i*tm:(i+1)*tm, :] @ z.T)

    z is passed ONCE (single in_spec, constant block index), so its bytes move
    HBM->VMEM exactly once and there is no duplicate row/column stream.
    """
    r = pl.multiple_of(pl.program_id(0) * tm, tm)
    rows = z_ref[pl.ds(r, tm), :]
    s = lax.dot_general(
        rows,
        z_ref[...],
        dimension_numbers=(((1,), (1,)), ((), ())),  # contract feature axis => rows @ z.T
        preferred_element_type=jnp.float32,
    )
    out_ref[...] = _sigmoid(s).astype(out_ref.dtype)


def _fused_kernel(z_row_ref, z_col_ref, out_ref):
    """(tm, tn) output tile; whole feature dim contracted in one MXU pass."""
    s = lax.dot_general(
        z_row_ref[...],
        z_col_ref[...],
        dimension_numbers=(((1,), (1,)), ((), ())),
        preferred_element_type=jnp.float32,
    )
    out_ref[...] = _sigmoid(s).astype(out_ref.dtype)


def _acc_kernel(z_row_ref, z_col_ref, out_ref, acc_ref):
    """Large-D fallback: accumulate over a k grid axis, sigmoid at the end."""
    k = pl.program_id(2)

    @pl.when(k == 0)
    def _():
        acc_ref[...] = jnp.zeros_like(acc_ref)

    acc_ref[...] += lax.dot_general(
        z_row_ref[...],
        z_col_ref[...],
        dimension_numbers=(((1,), (1,)), ((), ())),
        preferred_element_type=jnp.float32,
    )

    @pl.when(k == pl.num_programs(2) - 1)
    def _():
        out_ref[...] = _sigmoid(acc_ref[...]).astype(out_ref.dtype)


# ------------------------------------------------------------- tile helpers --

def _pick_tile(dim, preferred):
    """Largest 128-multiple tile <= preferred dividing dim, else the full dim."""
    if dim <= preferred:
        return dim
    for t in range(preferred, 127, -128):
        if dim % t == 0:
            return t
    return dim  # full-extent block is always legal


def _pick_row_tile(n):
    """Row tile for the resident-z path.

    Prefers >= 2 grid points whenever n >= 256 so a 'parallel' grid axis can be
    sharded across v7x's two TensorCores (harmless elsewhere)."""
    if n <= 128:
        return n
    for t in (512, 384, 256, 128):
        if n % t == 0 and n // t >= 2:
            return t
    return _pick_tile(n, 512)


# ------------------------------------------------------------------ wrapper --

@functools.partial(jax.jit, static_argnames=("tm", "tn", "tk", "out_dtype"))
def inner_product_decoder_matmul(z, *, tm=None, tn=None, tk=None, out_dtype=None):
    """adj = sigmoid(z @ z.T) via a Pallas TPU kernel."""
    N, D = z.shape
    out_dtype = z.dtype if out_dtype is None else jnp.dtype(out_dtype)
    op_item = jnp.dtype(z.dtype).itemsize
    out_item = jnp.dtype(out_dtype).itemsize

    if tk is None:
        tk = D if D <= 2048 else _pick_tile(D, 512)
    single_k = tk == D

    # -------- Path A: whole z resident in VMEM (small-z fast path) ----------
    if single_k and tm is None and tn is None:
        tm_a = _pick_row_tile(N)
        # z kept resident (budget 2x for safety), double-buffered (tm, N) out
        # tile, plus the f32 intermediate of the dot.
        est_a = 2 * N * D * op_item + 2 * tm_a * N * out_item + tm_a * N * 4
        if N % tm_a == 0 and est_a <= 20 * _MIB:
            vmem_limit = None if est_a <= 8 * _MIB else int(min(2 * est_a, 32 * _MIB))
            grid_spec = pltpu.PrefetchScalarGridSpec(
                num_scalar_prefetch=0,
                grid=(N // tm_a,),
                in_specs=[pl.BlockSpec((N, D), lambda i: (0, 0))],  # z, fetched once
                out_specs=pl.BlockSpec((tm_a, N), lambda i: (i, 0)),
            )
            return pl.pallas_call(
                functools.partial(_resident_kernel, tm=tm_a),
                out_shape=jax.ShapeDtypeStruct((N, N), out_dtype),
                grid_spec=grid_spec,
                compiler_params=pltpu.CompilerParams(
                    dimension_semantics=("parallel",),
                    vmem_limit_bytes=vmem_limit,
                ),
            )(z)

    # -------- Path B / C: (i, j[, k]) tiled ----------------------------------
    # tm >= tn: the column operand is the one re-streamed per inner step, so a
    # larger row tile cuts how many times z is swept.
    tm = _pick_tile(N, 512) if tm is None else tm
    tn = _pick_tile(N, 256) if tn is None else tn
    assert N % tm == 0 and N % tn == 0, "pad N to a tile multiple"
    assert D % tk == 0, "pad D to a tile multiple"

    vmem_est = (
        2 * (tm + tn) * tk * op_item
        + 2 * tm * tn * out_item
        + (0 if single_k else tm * tn * 4)
    )
    vmem_limit = None if vmem_est <= 8 * _MIB else int(min(2 * vmem_est, 32 * _MIB))

    if single_k:
        grid_spec = pltpu.PrefetchScalarGridSpec(
            num_scalar_prefetch=0,
            grid=(N // tm, N // tn),
            in_specs=[
                pl.BlockSpec((tm, tk), lambda i, j: (i, 0)),  # rows of z
                pl.BlockSpec((tn, tk), lambda i, j: (j, 0)),  # rows of z (for z.T)
            ],
            out_specs=pl.BlockSpec((tm, tn), lambda i, j: (i, j)),
        )
        kernel, dims = _fused_kernel, ("parallel", "parallel")
    else:
        grid_spec = pltpu.PrefetchScalarGridSpec(
            num_scalar_prefetch=0,
            grid=(N // tm, N // tn, D // tk),
            in_specs=[
                pl.BlockSpec((tm, tk), lambda i, j, k: (i, k)),
                pl.BlockSpec((tn, tk), lambda i, j, k: (j, k)),
            ],
            out_specs=pl.BlockSpec((tm, tn), lambda i, j, k: (i, j)),
            scratch_shapes=[pltpu.VMEM((tm, tn), jnp.float32)],
        )
        kernel, dims = _acc_kernel, ("parallel", "parallel", "arbitrary")

    return pl.pallas_call(
        kernel,
        out_shape=jax.ShapeDtypeStruct((N, N), out_dtype),
        grid_spec=grid_spec,
        compiler_params=pltpu.CompilerParams(
            dimension_semantics=dims,
            vmem_limit_bytes=vmem_limit,
        ),
    )(z, z)


def inner_product_decoder(z, *, dropout=0.0, training=False, rng=None,
                          use_bf16_operands=True, out_dtype=None):
    """Forward pass matching the PyTorch InnerProductDecoder module.

    use_bf16_operands: cast f32 inputs to bf16 for the MXU (the native operand
    dtype on v5e/v6e/v7x); accumulation stays f32 and the output keeps the
    input dtype. Set False for exact-f32 operands.
    """
    orig_dtype = z.dtype
    if training and dropout > 0.0:
        # Inverted dropout applied once to z before the self inner product —
        # identical to F.dropout semantics in the reference module.
        keep = 1.0 - dropout
        mask = jax.random.bernoulli(rng, keep, z.shape)
        z = jnp.where(mask, z / keep, jnp.zeros_like(z)).astype(orig_dtype)
    if use_bf16_operands and z.dtype == jnp.float32:
        z = z.astype(jnp.bfloat16)
    if out_dtype is None:
        out_dtype = orig_dtype
    return inner_product_decoder_matmul(z, out_dtype=out_dtype)


if __name__ == "__main__":
    key = jax.random.PRNGKey(0)
    k_z, k_z2, k_drop = jax.random.split(key, 3)

    # Small graph-embedding shapes: N=256 nodes, D=128 hidden features.
    N, D = 256, 128
    z = jax.random.normal(k_z, (N, D), dtype=jnp.float32)
    ref = jax.nn.sigmoid(z @ z.T)

    # Default path: bf16 MXU operands, f32 accumulation, f32 output,
    # resident-z kernel (single z DMA, grid=(2,) so both v7x TCs have work).
    adj = jax.block_until_ready(inner_product_decoder(z, dropout=0.5, training=False))
    assert adj.shape == (N, N) and adj.dtype == jnp.float32
    assert jnp.allclose(adj, ref, atol=5e-2, rtol=5e-2), "bf16-operand path mismatch"

    # Exact-f32 operand path (tighter numerics).
    adj_f32 = jax.block_until_ready(
        inner_product_decoder(z, dropout=0.5, training=False, use_bf16_operands=False))
    assert adj_f32.dtype == jnp.float32
    assert jnp.allclose(adj_f32, ref, atol=2e-2, rtol=2e-2), "f32-operand path mismatch"

    # Training-mode dropout (inverted dropout on z before z @ z.T).
    adj_train = jax.block_until_ready(
        inner_product_decoder(z, dropout=0.5, training=True, rng=k_drop))
    assert adj_train.shape == (N, N) and bool(jnp.isfinite(adj_train).all())

    # Exercise the (i, j) tiled path and the k-accumulator fallback at a
    # slightly larger shape with forced tiles.
    N2, D2 = 512, 256
    z2 = jax.random.normal(k_z2, (N2, D2), dtype=jnp.float32).astype(jnp.bfloat16)
    z2f = z2.astype(jnp.float32)
    ref2 = jax.nn.sigmoid(z2f @ z2f.T)
    adj_b = jax.block_until_ready(
        inner_product_decoder_matmul(z2, tm=256, tn=256, out_dtype=jnp.float32))
    assert jnp.allclose(adj_b, ref2, atol=5e-2, rtol=5e-2), "tiled path mismatch"
    adj_c = jax.block_until_ready(
        inner_product_decoder_matmul(z2, tm=256, tn=256, tk=128, out_dtype=jnp.float32))
    assert jnp.allclose(adj_c, ref2, atol=5e-2, rtol=5e-2), "accumulator path mismatch"

    print("KERNEL_OK")
</pallas_src>

<mosaic_0001>
module attributes {stable_mosaic.version = 11 : i64} {
  func.func @_resident_kernel(%arg0: i32, %arg1: memref<256x128xbf16, #tpu.memory_space<vmem>>, %arg2: memref<128x256xf32, #tpu.memory_space<vmem>>) attributes {dimension_semantics = [#tpu.dimension_semantics<parallel>], iteration_bounds = array<i64: 2>, scalar_prefetch = 0 : i64, scratch_operands = 0 : i64, tpu.core_type = #tpu.core_type<tc>, window_params = [{pipeline_mode = #tpu.pipeline_mode<synchronous>, transform_indices = @transform_0, window_bounds = array<i64: 256, 128>}, {transform_indices = @transform_1, window_bounds = array<i64: 128, 256>}]} {
    %c128_i32 = arith.constant 128 : i32
    %0 = arith.muli %arg0, %c128_i32 : i32
    %1 = tpu.assume_multiple %0, 128 : i32
    %2 = arith.index_cast %1 : i32 to index
    %c0 = arith.constant 0 : index
    %3 = vector.load %arg1[%2, %c0] : memref<256x128xbf16, #tpu.memory_space<vmem>>, vector<128x128xbf16>
    %c0_0 = arith.constant 0 : index
    %c0_1 = arith.constant 0 : index
    %4 = vector.load %arg1[%c0_0, %c0_1] : memref<256x128xbf16, #tpu.memory_space<vmem>>, vector<256x128xbf16>
    %cst = arith.constant dense<0.000000e+00> : vector<128x256xf32>
    %5 = tpu.matmul %3, %4, %cst {dimension_numbers = #tpu.dot_dimension_numbers<[1], [1], [0], [0], [0, 0, 1, 0], [], []>} : vector<128x128xbf16>, vector<256x128xbf16>, vector<128x256xf32> -> vector<128x256xf32>
    %cst_2 = arith.constant 5.000000e-01 : f32
    %6 = vector.broadcast %cst_2 : f32 to vector<128x256xf32>
    %7 = arith.mulf %6, %5 : vector<128x256xf32>
    %8 = math.tanh %7 : vector<128x256xf32>
    %cst_3 = arith.constant 1.000000e+00 : f32
    %9 = vector.broadcast %cst_3 : f32 to vector<128x256xf32>
    %10 = arith.addf %9, %8 : vector<128x256xf32>
    %cst_4 = arith.constant 5.000000e-01 : f32
    %11 = vector.broadcast %cst_4 : f32 to vector<128x256xf32>
    %12 = arith.mulf %11, %10 : vector<128x256xf32>
    %c0_5 = arith.constant 0 : index
    %c0_6 = arith.constant 0 : index
    %13 = vector.load %arg2[%c0_5, %c0_6] : memref<128x256xf32, #tpu.memory_space<vmem>>, vector<128x256xf32>
    tpu.vector_store %arg2[%c0_5, %c0_6], %12 {strides = array<i32>} : memref<128x256xf32, #tpu.memory_space<vmem>>, vector<128x256xf32>,
    return
  }
  func.func @transform_0(%arg0: i32) -> (i32, i32) {
    %c0_i32 = arith.constant 0 : i32
    %c0_i32_0 = arith.constant 0 : i32
    %c0_i32_1 = arith.constant 0 : i32
    return %c0_i32, %c0_i32_0 : i32, i32
  }
  func.func @transform_1(%arg0: i32) -> (i32, i32) {
    %c0_i32 = arith.constant 0 : i32
    %c0_i32_0 = arith.constant 0 : i32
    return %arg0, %c0_i32 : i32, i32
  }
}

</mosaic_0001>

<bundles_post_ra>
// kernel: inner_product_decoder_matmul.1
= control target key start
LH: loop header
LB: loop body
LE: loop exit
PB: predicated region body
PF: predicated region fallthrough
CT: control target
= control target key end

     0   :  { %6 = vsyncpa [#allocation3], 0  ;;  %s1186_s0 = inlined_call_operand.hbm [shape: bf16[256,128], index: 0, kind: input, shape index: {}]   ;;  %s1187_s1 = inlined_call_operand.hbm [shape: f32[256,256], index: 1, kind: output, shape index: {}]  }
   0x1   :  { %7 = vsyncpa [#allocation4], 0 }
   0x2   :  { %9 = vsyncpa [#allocation4 + $0x1], 0  ;;  %s1003_s6 = smov 0   ;;  %s1005_s7 = smov 0  }
   0x3   :  { %s1007_s8 = smov 0   ;;  %s1009_s9 = smov 0  }
   0x4 LB: > { %s1024_s10 = sadd.s32 4294967295, %s985_s9   ;;  %s661_s11 = sadd.s32 4294967294, %s985_s9   ;;  %s985_s9 = sphi %s1009_s9, %s1203_s9   ;;  %s981_s8 = sphi %s1007_s8, %s1202_s8   ;;  %s977_s7 = sphi %s1005_s7, %s1201_s7   ;;  %s973_s6 = sphi %s1003_s6, %s1200_s6  }
   0x5   : > { %s1028_s12 = sadd.s32 1, %s985_s9   ;;  %s43_s13 = sadd.s32 1, %s981_s8 }
   0x6   : > { %s40_s14 = ssub.s32 %s985_s9, %s1028_s12  ;;  %p53_p0 = scmp.ne.s32.totalorder %s981_s8, %s977_s7 }
   0x7   : > { %p41_p1 = scmp.eq.s32.totalorder %s40_s14, 0  ;;  %p54_p2 = scmp.eq.s32.totalorder %s1024_s10, 1 }
   0x8   : > { %p59_p3 = scmp.ne.s32.totalorder %s977_s7, %s973_s6  ;;  %p60_p4 = scmp.eq.s32.totalorder %s661_s11, 1 }
   0x9   : > { %s1039_s15 = scalar_select %p41_p1, %s981_s8, %s43_s13  }
   0xa   : > { %p1041_p5 = por %p54_p2, %p53_p0  ;;  %p1045_p6 = por %p60_p4, %p59_p3 }
   0xb   : > { %p662_p7 = scmp.ge.s32.totalorder %s985_s9, 1  ;;  %p67_p8 = scmp.lt.s32.totalorder %s985_s9, 3 }
   0xc   : > { %s1191_s16 = scalar_select %p1041_p5, 1, 0 }
   0xd   : > { %s1192_s17 = scalar_select %p1045_p6, 1, 0 }
   0xe   : > { %p1188_p9 = scmp.eq.s32.totalorder %s1024_s10, 0  ;;  %p1052_p10 = pnand %p662_p7, %p67_p8 }
   0xf   : > { %s987_s19 = smov [#allocation2]   ;;  %s891_s24 = scalar_lea.hbm %s1186_s0, 2048 }
  0x10   : > { %s1193_s18 = scalar_select %p1052_p10, 1, 0 }
  0x11   : > { %s79_s20 = sshll.u32 %s987_s19, 4  ;;  %p755_p11 = pneg %p1052_p10  ;;  %s80_s20 = int_to_ptr.vmem [resolvable:$true] %s79_s20 }
  0x12   : > { %p892_p13 = scmp.ne.s32.totalorder %s1186_s0, %s891_s24  ;;  %p898_p3 = scmp.lt.u32.totalorder %s891_s24, %s1186_s0 }
  0x13   : > { %p1060_p12 = pnand %p1188_p9, %p755_p11 }
  0x15   : > { %p893_p0 = pneg %p1060_p12 }
  0x17   : > { %p894_p1 = pnand %p893_p0, %p892_p13 }
  0x19   : > { %p895_p2 = pneg %p894_p1 }
  0x1b   : > { %p900_p4 = pnand %p898_p3, %p895_p2 }
  0x1d   : > { %903 = shalt.err (!%p900_p4)
}
  0x1e   : > { %s904_s29 = scalar_lea.vmem %s80_s20, 2048  ;;  %p912_p9 = scmp.lt.s32.totalorder %s80_s20, %s80_s20 }
  0x1f   : > { %p905_p7 = scmp.ne.s32.totalorder %s80_s20, %s904_s29  ;;  %p913_p6 = scmp.lt.s32.totalorder %s904_s29, %s904_s29 }
  0x21   : > { %p907_p8 = pnand %p905_p7, %p893_p0  ;;  %p914_p5 = por %p913_p6, %p912_p9 }
  0x23   : > { %p908_p11 = pneg %p907_p8 }
  0x25   : > { %p915_p10 = pnand %p914_p5, %p908_p11 }
  0x27   : > { %918 = shalt.err (!%p915_p10)
}
  0x28   : > { %s988_s30 = smov 64   ;;  %s989_s2 = smov 4  }
  0x29   : > { %758 = dma.hbm_to_vmem [thread:$0]  (!%p1060_p12), %s1186_s0, 2048, %s80_s20, [#allocation3], %s988_s30, %s988_s30, %s989_s2  }
  0x2a   : > { %p1195_p13 = scmp.ne.s32.totalorder %s1193_s18, 0 }
  0x2b   : > { %p1196_p1 = scmp.eq.s32.totalorder (!%p1195_p13), %s1024_s10, 0 }
  0x2c   : > { %95 = sbr.rel (%p1195_p13) target bundleno = 395 (0x18b), region = 24 }
  0x33   : > { %964 = dma.done.wait (%p1196_p1), [#allocation3], 2048   ;;  %p1197_p0 = pmov %p1196_p1 }
  0x34   : > { %v803_v0 = vld [vmem:[#allocation2 + $0x40] sm:$0xff]   ;;  %v805_v2 = vld [vmem:[#allocation2 + $0x48] sm:$0xff]   ;;  %s667_s5 = sshll.u32 %s1024_s10, 7  ;;  %v807_v4 = vld [vmem:[#allocation2 + $0x50] sm:$0xff]   ;;  %s107_s18 = sand.u32 1, %s977_s7  }
  0x35   : > { %966 = vsyncadd (%p1197_p0), [#allocation3], 4294965248  ;;  %v804_v1 = vld [vmem:[#allocation2] sm:$0xff]   ;;  %701 = vmatprep.subr.bf16.mxu0 %v803_v0  ;;  %733 = vmatprep.subr.bf16.mxu1 %v803_v0  ;;  %v806_v3 = vld [vmem:[#allocation2 + $0x8] sm:$0xff]   ;;  %s113_s11 = sshra.s32 %s667_s5, 3  ;;  %s666_s19 = sshll.u32 %s107_s18, 8 }
  0x36   : > { %702 = vmatpush3.bf16.xpose.msra.mxu0 %v804_v1  ;;  %741 = vmatpush3.bf16.xpose.msra.mxu1 %v804_v1  ;;  %s668_s13 = sshll.u32 %s113_s11, 2  ;;  %v808_v5 = vld [vmem:[#allocation2 + $0x10] sm:$0xff]   ;;  %v809_v6 = vld [vmem:[#allocation2 + $0x58] sm:$0xff]   ;;  %v811_v10 = vld [vmem:[#allocation2 + $0x60] sm:$0xff]   ;;  %s1100_s20 = scalar_lea.vmem [#allocation5], %s666_s19 }
  0x37   : > { %703 = vmatprep.subr.bf16.mxu0 %v805_v2  ;;  %734 = vmatprep.subr.bf16.mxu1 %v805_v2  ;;  %s1087_s14 = scalar_lea.vmem [#allocation2], %s668_s13  ;;  %v810_v9 = vld [vmem:[#allocation2 + $0x18] sm:$0xff]   ;;  %v812_v11 = vld [vmem:[#allocation2 + $0x20] sm:$0xff]   ;;  %v813_v12 = vld [vmem:[#allocation2 + $0x68] sm:$0xff]   ;;  %s700_s21 = sshll.u32 %s1024_s10, 12 }
  0x38   : > { %v819_v7 = vld [vmem:[%s1087_s14] sm:$0xff]   ;;  %v814_v13 = vld [vmem:[#allocation2 + $0x28] sm:$0xff]   ;;  %v815_v14 = vld [vmem:[#allocation2 + $0x70] sm:$0xff]   ;;  %s597_s22 = sshll.u32 %s1100_s20, 4  ;;  %s1136_s25 = scalar_lea.hbm %s1187_s1, %s700_s21  ;;  %s1138_s22 = int_to_ptr.vmem [resolvable:$true] %s597_s22 }
  0x39   : > { %v820_v8 = vld [vmem:[%s1087_s14 + $0x20] sm:$0xff]   ;;  %717 = vmatprep.mubr.bf16.mxu0 %v819_v7  ;;  %v816_v15 = vld [vmem:[#allocation2 + $0x30] sm:$0xff]   ;;  %v817_v16 = vld [vmem:[#allocation2 + $0x78] sm:$0xff]   ;;  %s1145_s10 = scalar_lea.sflag [#allocation4], %s107_s18  ;;  %s919_s26 = scalar_lea.vmem %s1138_s22, 4096 }
  0x3a   : > { %725 = vmatprep.mubr.bf16.mxu1 %v820_v8  ;;  %v818_v17 = vld [vmem:[#allocation2 + $0x38] sm:$0xff]   ;;  %v821_v18 = vld [vmem:[%s1087_s14 + $0x8] sm:$0xff]   ;;  %v823_v20 = vld [vmem:[%s1087_s14 + $0x10] sm:$0xff]   ;;  %p920_p5 = scmp.ne.s32.totalorder %s1138_s22, %s919_s26  ;;  %p1198_p6 = scmp.ne.s32.totalorder %s1191_s16, 0 }
  0x3b   : > { %v822_v19 = vld [vmem:[%s1087_s14 + $0x28] sm:$0xff]   ;;  %v824_v21 = vld [vmem:[%s1087_s14 + $0x30] sm:$0xff]   ;;  %v825_v22 = vld [vmem:[%s1087_s14 + $0x18] sm:$0xff]   ;;  %s990_s27 = smov [#allocation5]  }
  0x3c   : > { %v826_v23 = vld [vmem:[%s1087_s14 + $0x38] sm:$0xff]   ;;  %p921_p9 = pnand %p920_p5, %p1198_p6  ;;  %s923_s28 = sshll.u32 %s990_s27, 4  ;;  %s924_s28 = int_to_ptr.vmem [resolvable:$false] %s923_s28 }
  0x3d   : > { %s925_s29 = scalar_lea.vmem %s924_s28, 8192  ;;  %p926_p12 = scmp.lt.s32.totalorder %s1138_s22, %s924_s28 }
  0x3e   : > { %704 = vmatpush3.bf16.xpose.msra.mxu0 %v806_v3  ;;  %742 = vmatpush3.bf16.xpose.msra.mxu1 %v806_v3  ;;  %p922_p10 = pneg %p921_p9  ;;  %p927_p2 = scmp.lt.s32.totalorder %s925_s29, %s919_s26 }
  0x3f   : > { %705 = vmatprep.subr.bf16.mxu0 %v807_v4  ;;  %735 = vmatprep.subr.bf16.mxu1 %v807_v4 }
  0x40   : > { %p928_p3 = por %p927_p2, %p926_p12 }
  0x42   : > { %p929_p4 = pnand %p928_p3, %p922_p10 }
  0x46   : > { %706 = vmatpush3.bf16.xpose.msra.mxu0 %v808_v5  ;;  %743 = vmatpush3.bf16.xpose.msra.mxu1 %v808_v5 }
  0x47   : > { %707 = vmatprep.subr.bf16.mxu0 %v809_v6  ;;  %736 = vmatprep.subr.bf16.mxu1 %v809_v6 }
  0x4e   : > { %708 = vmatpush3.bf16.xpose.msra.mxu0 %v810_v9  ;;  %744 = vmatpush3.bf16.xpose.msra.mxu1 %v810_v9 }
  0x4f   : > { %709 = vmatprep.subr.bf16.mxu0 %v811_v10  ;;  %737 = vmatprep.subr.bf16.mxu1 %v811_v10 }
  0x56   : > { %710 = vmatpush3.bf16.xpose.msra.mxu0 %v812_v11  ;;  %745 = vmatpush3.bf16.xpose.msra.mxu1 %v812_v11 }
  0x57   : > { %711 = vmatprep.subr.bf16.mxu0 %v813_v12  ;;  %738 = vmatprep.subr.bf16.mxu1 %v813_v12 }
  0x5e   : > { %712 = vmatpush3.bf16.xpose.msra.mxu0 %v814_v13  ;;  %746 = vmatpush3.bf16.xpose.msra.mxu1 %v814_v13 }
  0x5f   : > { %713 = vmatprep.subr.bf16.mxu0 %v815_v14  ;;  %739 = vmatprep.subr.bf16.mxu1 %v815_v14 }
  0x66   : > { %714 = vmatpush3.bf16.xpose.msra.mxu0 %v816_v15  ;;  %747 = vmatpush3.bf16.xpose.msra.mxu1 %v816_v15 }
  0x67   : > { %715 = vmatprep.subr.bf16.mxu0 %v817_v16  ;;  %740 = vmatprep.subr.bf16.mxu1 %v817_v16 }
  0x6e   : > { %716 = vmatpush3.bf16.xpose.msra.mxu0 %v818_v17  ;;  %748 = vmatpush3.bf16.xpose.msra.mxu1 %v818_v17 }
  0x75   : > { %718 = vmatmul.mubr.bf16.vlgmr.msra.gmra.mrb[0].mxu0 %v819_v7  ;;  %726 = vmatmul.mubr.bf16.vlgmr.msra.gmra.mrb[0].mxu1 %v820_v8 }
  0x76   : > { %719 = vmatprep.mubr.bf16.mxu0 %v821_v18  ;;  %727 = vmatprep.mubr.bf16.mxu1 %v822_v19 }
  0x7d   : > { %720 = vmatmul.mubr.bf16.gmra.mrb[4].mxu0 %v821_v18  ;;  %728 = vmatmul.mubr.bf16.gmra.mrb[4].mxu1 %v822_v19 }
  0x7e   : > { %721 = vmatprep.mubr.bf16.mxu0 %v823_v20  ;;  %729 = vmatprep.mubr.bf16.mxu1 %v824_v21 }
  0x85   : > { %722 = vmatmul.mubr.bf16.gmra.mrb[8].mxu0 %v823_v20  ;;  %730 = vmatmul.mubr.bf16.gmra.mrb[8].mxu1 %v824_v21 }
  0x86   : > { %723 = vmatprep.mubr.bf16.mxu0 %v825_v22  ;;  %731 = vmatprep.mubr.bf16.mxu1 %v826_v23 }
  0x8d   : > { %724 = vmatmul.mubr.bf16.gmra.mrb[12].mxu0 %v825_v22  ;;  %732 = vmatmul.mubr.bf16.gmra.mrb[12].mxu1 %v826_v23 }
 0x148   : > { %v343_v24 = vpop.f32.mrb[0].mxu0  ;;  %v383_v25 = vpop.f32.mrb[0].mxu1 }
 0x149   : > { %v422_v26 = vmul.f32 0.5, %v343_v24  ;;  %v438_v27 = vmul.f32 0.5, %v383_v25  ;;  %v345_v28 = vpop.f32.mrb[1].mxu0  ;;  %v385_v29 = vpop.f32.mrb[1].mxu1 }
 0x14a   : > { %v423_v30 = vmul.f32 0.5, %v345_v28  ;;  %v439_v31 = vmul.f32 0.5, %v385_v29  ;;  %v347_v32 = vpop.f32.mrb[2].mxu0  ;;  %v387_v33 = vpop.f32.mrb[2].mxu1 }
 0x14b   : > { %827 = vtanh.f32 %v422_v26  ;;  %v424_v34 = vmul.f32 0.5, %v347_v32  ;;  %v349_v35 = vpop.f32.mrb[3].mxu0  ;;  %v389_v36 = vpop.f32.mrb[3].mxu1  ;;  %v440_v37 = vmul.f32 0.5, %v387_v33 }
 0x14c   : > { %829 = vtanh.f32 %v438_v27  ;;  %v425_v38 = vmul.f32 0.5, %v349_v35  ;;  %v441_v39 = vmul.f32 0.5, %v389_v36 }
 0x14d   : > { %831 = vtanh.f32 %v423_v30 }
 0x14e   : > { %833 = vtanh.f32 %v439_v31 }
 0x14f   : > { %835 = vtanh.f32 %v424_v34 }
 0x150   : > { %837 = vtanh.f32 %v440_v37  ;;  %v353_v40 = vpop.f32.mrb[4].mxu0  ;;  %v393_v41 = vpop.f32.mrb[4].mxu1 }
 0x151   : > { %839 = vtanh.f32 %v425_v38  ;;  %v426_v42 = vmul.f32 0.5, %v353_v40  ;;  %v442_v43 = vmul.f32 0.5, %v393_v41  ;;  %v355_v44 = vpop.f32.mrb[5].mxu0  ;;  %v395_v45 = vpop.f32.mrb[5].mxu1 }
 0x152   : > { %841 = vtanh.f32 %v441_v39  ;;  %v427_v46 = vmul.f32 0.5, %v355_v44  ;;  %v443_v47 = vmul.f32 0.5, %v395_v45  ;;  %v357_v48 = vpop.f32.mrb[6].mxu0  ;;  %v397_v49 = vpop.f32.mrb[6].mxu1 }
 0x153   : > { %843 = vtanh.f32 %v426_v42  ;;  %v428_v50 = vmul.f32 0.5, %v357_v48  ;;  %v359_v51 = vpop.f32.mrb[7].mxu0  ;;  %v399_v52 = vpop.f32.mrb[7].mxu1  ;;  %v444_v53 = vmul.f32 0.5, %v397_v49 }
 0x154   : > { %845 = vtanh.f32 %v442_v43  ;;  %v429_v55 = vmul.f32 0.5, %v359_v51  ;;  %v445_v58 = vmul.f32 0.5, %v399_v52 }
 0x155   : > { %v828_v54 = vpop.eup %827  ;;  %847 = vtanh.f32 %v427_v46 }
 0x156   : > { %v830_v56 = vpop.eup %829  ;;  %v486_v57 = vadd.f32 1.0, %v828_v54  ;;  %849 = vtanh.f32 %v443_v47 }
 0x157   : > { %v832_v59 = vpop.eup %831  ;;  %v502_v60 = vadd.f32 1.0, %v830_v56  ;;  %851 = vtanh.f32 %v428_v50 }
 0x158   : > { %v834_v61 = vpop.eup %833  ;;  %v518_v62 = vmul.f32 0.5, %v486_v57  ;;  %v487_v63 = vadd.f32 1.0, %v832_v59  ;;  %853 = vtanh.f32 %v444_v53  ;;  %v363_v0 = vpop.f32.mrb[8].mxu0 }
 0x159   : > { %v403_v1 = vpop.f32.mrb[8].mxu1  ;;  %v836_v2 = vpop.eup %835  ;;  %v534_v3 = vmul.f32 0.5, %v502_v60  ;;  %v503_v4 = vadd.f32 1.0, %v834_v61  ;;  %855 = vtanh.f32 %v429_v55  ;;  %v430_v5 = vmul.f32 0.5, %v363_v0 }
 0x15a   : > { %v365_v6 = vpop.f32.mrb[9].mxu0  ;;  %v405_v7 = vpop.f32.mrb[9].mxu1  ;;  %550 = vst [vmem:[%s1100_s20] sm:$0xff] %v518_v62  ;;  %v519_v9 = vmul.f32 0.5, %v487_v63  ;;  %v488_v10 = vadd.f32 1.0, %v836_v2  ;;  %857 = vtanh.f32 %v445_v58  ;;  %v446_v11 = vmul.f32 0.5, %v403_v1 }
 0x15b   : > { %v838_v8 = vpop.eup %837  ;;  %v367_v12 = vpop.f32.mrb[10].mxu0  ;;  %566 = vst [vmem:[%s1100_s20 + $0x80] sm:$0xff] %v534_v3  ;;  %v535_v15 = vmul.f32 0.5, %v503_v4  ;;  %859 = vtanh.f32 %v430_v5  ;;  %v431_v17 = vmul.f32 0.5, %v365_v6  ;;  %v447_v23 = vmul.f32 0.5, %v405_v7 }
 0x15c   : > { %v407_v13 = vpop.f32.mrb[10].mxu1  ;;  %v840_v14 = vpop.eup %839  ;;  %v504_v16 = vadd.f32 1.0, %v838_v8  ;;  %551 = vst [vmem:[%s1100_s20 + $0x8] sm:$0xff] %v519_v9  ;;  %v520_v21 = vmul.f32 0.5, %v488_v10  ;;  %861 = vtanh.f32 %v446_v11  ;;  %v432_v27 = vmul.f32 0.5, %v367_v12 }
 0x15d   : > { %v369_v18 = vpop.f32.mrb[11].mxu0  ;;  %v409_v19 = vpop.f32.mrb[11].mxu1  ;;  %v489_v22 = vadd.f32 1.0, %v840_v14  ;;  %567 = vst [vmem:[%s1100_s20 + $0x88] sm:$0xff] %v535_v15  ;;  %863 = vtanh.f32 %v431_v17  ;;  %v448_v31 = vmul.f32 0.5, %v407_v13 }
 0x15e   : > { %v842_v20 = vpop.eup %841  ;;  %v536_v25 = vmul.f32 0.5, %v504_v16  ;;  %552 = vst [vmem:[%s1100_s20 + $0x10] sm:$0xff] %v520_v21  ;;  %865 = vtanh.f32 %v447_v23  ;;  %v433_v35 = vmul.f32 0.5, %v369_v18  ;;  %v449_v39 = vmul.f32 0.5, %v409_v19 }
 0x15f   : > { %v844_v24 = vpop.eup %843  ;;  %v505_v26 = vadd.f32 1.0, %v842_v20  ;;  %v521_v29 = vmul.f32 0.5, %v489_v22  ;;  %867 = vtanh.f32 %v432_v27 }
 0x160   : > { %v846_v28 = vpop.eup %845  ;;  %v490_v30 = vadd.f32 1.0, %v844_v24  ;;  %568 = vst [vmem:[%s1100_s20 + $0x90] sm:$0xff] %v536_v25  ;;  %869 = vtanh.f32 %v448_v31  ;;  %v373_v40 = vpop.f32.mrb[12].mxu0 }
 0x161   : > { %v848_v32 = vpop.eup %847  ;;  %v537_v33 = vmul.f32 0.5, %v505_v26  ;;  %v506_v34 = vadd.f32 1.0, %v846_v28  ;;  %553 = vst [vmem:[%s1100_s20 + $0x18] sm:$0xff] %v521_v29  ;;  %v413_v41 = vpop.f32.mrb[12].mxu1  ;;  %871 = vtanh.f32 %v433_v35  ;;  %v434_v45 = vmul.f32 0.5, %v373_v40 }
 0x162   : > { %v850_v36 = vpop.eup %849  ;;  %v522_v37 = vmul.f32 0.5, %v490_v30  ;;  %v491_v38 = vadd.f32 1.0, %v848_v32  ;;  %v375_v46 = vpop.f32.mrb[13].mxu0  ;;  %873 = vtanh.f32 %v449_v39  ;;  %v450_v51 = vmul.f32 0.5, %v413_v41 }
 0x163   : > { %v852_v42 = vpop.eup %851  ;;  %569 = vst [vmem:[%s1100_s20 + $0x98] sm:$0xff] %v537_v33  ;;  %v538_v43 = vmul.f32 0.5, %v506_v34  ;;  %v507_v44 = vadd.f32 1.0, %v850_v36  ;;  %v415_v47 = vpop.f32.mrb[13].mxu1  ;;  %875 = vtanh.f32 %v434_v45  ;;  %v435_v57 = vmul.f32 0.5, %v375_v46 }
 0x164   : > { %v854_v48 = vpop.eup %853  ;;  %554 = vst [vmem:[%s1100_s20 + $0x20] sm:$0xff] %v522_v37  ;;  %v523_v49 = vmul.f32 0.5, %v491_v38  ;;  %v492_v50 = vadd.f32 1.0, %v852_v42  ;;  %v377_v52 = vpop.f32.mrb[14].mxu0  ;;  %877 = vtanh.f32 %v450_v51  ;;  %v451_v63 = vmul.f32 0.5, %v415_v47 }
 0x165   : > { %v417_v53 = vpop.f32.mrb[14].mxu1  ;;  %v856_v54 = vpop.eup %855  ;;  %570 = vst [vmem:[%s1100_s20 + $0xa0] sm:$0xff] %v538_v43  ;;  %v539_v55 = vmul.f32 0.5, %v507_v44  ;;  %v508_v56 = vadd.f32 1.0, %v854_v48  ;;  %879 = vtanh.f32 %v435_v57  ;;  %v436_v3 = vmul.f32 0.5, %v377_v52 }
 0x166   : > { %v379_v58 = vpop.f32.mrb[15].mxu0  ;;  %v419_v59 = vpop.f32.mrb[15].mxu1  ;;  %555 = vst [vmem:[%s1100_s20 + $0x28] sm:$0xff] %v523_v49  ;;  %v524_v61 = vmul.f32 0.5, %v492_v50  ;;  %v493_v62 = vadd.f32 1.0, %v856_v54  ;;  %881 = vtanh.f32 %v451_v63  ;;  %v452_v7 = vmul.f32 0.5, %v417_v53 }
 0x167   : > { %v858_v60 = vpop.eup %857  ;;  %571 = vst [vmem:[%s1100_s20 + $0xa8] sm:$0xff] %v539_v55  ;;  %v540_v1 = vmul.f32 0.5, %v508_v56  ;;  %883 = vtanh.f32 %v436_v3  ;;  %v437_v11 = vmul.f32 0.5, %v379_v58  ;;  %v453_v15 = vmul.f32 0.5, %v419_v59 }
 0x168   : > { %v860_v0 = vpop.eup %859  ;;  %v509_v2 = vadd.f32 1.0, %v858_v60  ;;  %556 = vst [vmem:[%s1100_s20 + $0x30] sm:$0xff] %v524_v61  ;;  %v525_v5 = vmul.f32 0.5, %v493_v62  ;;  %885 = vtanh.f32 %v452_v7 }
 0x169   : > { %v862_v4 = vpop.eup %861  ;;  %v494_v6 = vadd.f32 1.0, %v860_v0  ;;  %572 = vst [vmem:[%s1100_s20 + $0xb0] sm:$0xff] %v540_v1  ;;  %887 = vtanh.f32 %v437_v11 }
 0x16a   : > { %v864_v8 = vpop.eup %863  ;;  %v541_v9 = vmul.f32 0.5, %v509_v2  ;;  %v510_v10 = vadd.f32 1.0, %v862_v4  ;;  %557 = vst [vmem:[%s1100_s20 + $0x38] sm:$0xff] %v525_v5  ;;  %889 = vtanh.f32 %v453_v15 }
 0x16b   : > { %v866_v12 = vpop.eup %865  ;;  %v526_v13 = vmul.f32 0.5, %v494_v6  ;;  %v495_v14 = vadd.f32 1.0, %v864_v8 }
 0x16c   : > { %v868_v16 = vpop.eup %867  ;;  %573 = vst [vmem:[%s1100_s20 + $0xb8] sm:$0xff] %v541_v9  ;;  %v542_v17 = vmul.f32 0.5, %v510_v10  ;;  %v511_v18 = vadd.f32 1.0, %v866_v12 }
 0x16d   : > { %v870_v19 = vpop.eup %869  ;;  %558 = vst [vmem:[%s1100_s20 + $0x40] sm:$0xff] %v526_v13  ;;  %v527_v20 = vmul.f32 0.5, %v495_v14  ;;  %v496_v21 = vadd.f32 1.0, %v868_v16 }
 0x16e   : > { %v872_v22 = vpop.eup %871  ;;  %574 = vst [vmem:[%s1100_s20 + $0xc0] sm:$0xff] %v542_v17  ;;  %v543_v23 = vmul.f32 0.5, %v511_v18  ;;  %v512_v24 = vadd.f32 1.0, %v870_v19 }
 0x16f   : > { %v874_v25 = vpop.eup %873  ;;  %559 = vst [vmem:[%s1100_s20 + $0x48] sm:$0xff] %v527_v20  ;;  %v528_v26 = vmul.f32 0.5, %v496_v21  ;;  %v497_v27 = vadd.f32 1.0, %v872_v22 }
 0x170   : > { %v876_v28 = vpop.eup %875  ;;  %575 = vst [vmem:[%s1100_s20 + $0xc8] sm:$0xff] %v543_v23  ;;  %v544_v29 = vmul.f32 0.5, %v512_v24  ;;  %v513_v30 = vadd.f32 1.0, %v874_v25 }
 0x171   : > { %v878_v31 = vpop.eup %877  ;;  %560 = vst [vmem:[%s1100_s20 + $0x50] sm:$0xff] %v528_v26  ;;  %v529_v32 = vmul.f32 0.5, %v497_v27  ;;  %v498_v33 = vadd.f32 1.0, %v876_v28 }
 0x172   : > { %v880_v34 = vpop.eup %879  ;;  %576 = vst [vmem:[%s1100_s20 + $0xd0] sm:$0xff] %v544_v29  ;;  %v545_v35 = vmul.f32 0.5, %v513_v30  ;;  %v514_v36 = vadd.f32 1.0, %v878_v31 }
 0x173   : > { %v882_v37 = vpop.eup %881  ;;  %561 = vst [vmem:[%s1100_s20 + $0x58] sm:$0xff] %v529_v32  ;;  %v530_v38 = vmul.f32 0.5, %v498_v33  ;;  %v499_v39 = vadd.f32 1.0, %v880_v34 }
 0x174   : > { %v884_v40 = vpop.eup %883  ;;  %577 = vst [vmem:[%s1100_s20 + $0xd8] sm:$0xff] %v545_v35  ;;  %v546_v41 = vmul.f32 0.5, %v514_v36  ;;  %v515_v42 = vadd.f32 1.0, %v882_v37 }
 0x175   : > { %v886_v43 = vpop.eup %885  ;;  %562 = vst [vmem:[%s1100_s20 + $0x60] sm:$0xff] %v530_v38  ;;  %v531_v44 = vmul.f32 0.5, %v499_v39  ;;  %v500_v45 = vadd.f32 1.0, %v884_v40 }
 0x176   : > { %v888_v46 = vpop.eup %887  ;;  %578 = vst [vmem:[%s1100_s20 + $0xe0] sm:$0xff] %v546_v41  ;;  %v547_v47 = vmul.f32 0.5, %v515_v42  ;;  %v516_v48 = vadd.f32 1.0, %v886_v43 }
 0x177   : > { %v890_v49 = vpop.eup %889  ;;  %563 = vst [vmem:[%s1100_s20 + $0x68] sm:$0xff] %v531_v44  ;;  %v532_v50 = vmul.f32 0.5, %v500_v45  ;;  %v501_v51 = vadd.f32 1.0, %v888_v46 }
 0x178   : > { %579 = vst [vmem:[%s1100_s20 + $0xe8] sm:$0xff] %v547_v47  ;;  %v548_v52 = vmul.f32 0.5, %v516_v48  ;;  %v517_v53 = vadd.f32 1.0, %v890_v49 }
 0x179   : > { %564 = vst [vmem:[%s1100_s20 + $0x70] sm:$0xff] %v532_v50  ;;  %v533_v54 = vmul.f32 0.5, %v501_v51 }
 0x17a   : > { %580 = vst [vmem:[%s1100_s20 + $0xf0] sm:$0xff] %v548_v52  ;;  %v549_v55 = vmul.f32 0.5, %v517_v53 }
 0x17b   : > { %565 = vst [vmem:[%s1100_s20 + $0x78] sm:$0xff] %v533_v54 }
 0x17c   : > { %581 = vst [vmem:[%s1100_s20 + $0xf8] sm:$0xff] %v549_v55 }
 0x17d   : > { %932 = shalt.err (!%p929_p4)
}
 0x17e   : > { %s933_s30 = scalar_lea.hbm %s1136_s25, 4096  ;;  %s937_s4 = scalar_lea.hbm %s1187_s1, 8192 }
 0x17f   : > { %p934_p7 = scmp.ne.s32.totalorder %s1136_s25, %s933_s30  ;;  %p938_p13 = scmp.lt.u32.totalorder %s1136_s25, %s1187_s1 }
 0x180   : > { %p939_p1 = scmp.lt.u32.totalorder %s937_s4, %s933_s30  ;;  %p941_p5 = scmp.lt.u32.totalorder %s933_s30, %s1136_s25 }
 0x181   : > { %p935_p8 = pnand %p934_p7, %p1198_p6 }
 0x182   : > { %p940_p0 = por %p939_p1, %p938_p13 }
 0x183   : > { %p936_p11 = pneg %p935_p8 }
 0x184   : > { %p942_p9 = por %p941_p5, %p940_p0 }
 0x186   : > { %p943_p10 = pnand %p942_p9, %p936_p11 }
 0x188   : > { %946 = shalt.err (!%p943_p10)
}
 0x189   : > { %s991_s13 = smov 256   ;;  %s992_s14 = smov 16  }
 0x18a   : > { %753 = dma.vmem_to_hbm [thread:$0]  (%p1198_p6), %s1138_s22, 4096, %s1136_s25, %s1145_s10, %s991_s13, %s991_s13, %s992_s14  }
 0x18b PF: > { %p765_p12 = scmp.ge.s32.totalorder %s985_s9, 2  ;;  %s612_s18 = sand.u32 1, %s973_s6  }
 0x18c   : > { %p1199_p2 = scmp.ne.s32.totalorder %s1192_s17, 0  ;;  %s613_s19 = scalar_lea.sflag [#allocation4], %s612_s18 }
 0x18e   : > { %p760_p3 = pnand %p765_p12, %p1199_p2 }
 0x190   : > { %968 = dma.done.wait (!%p760_p3), %s613_s19, 4096  }
 0x191   : > { %970 = vsyncadd (!%p760_p3), %s613_s19, 4294963200  ;;  %p12_p4 = scmp.ge.s32.totalorder %s1028_s12, 4   ;;  %s1200_s6 = smov %s977_s7 }
 0x192   : > { %s1201_s7 = smov %s981_s8  ;;  %s1202_s8 = smov %s1039_s15 }
 0x193   : > { %s1203_s9 = smov %s1028_s12  ;;  %14 = sbr.rel (!%p12_p4) target bundleno = 4 (0x4), region = 62 }
 0x19a   :  { %618 = vsyncpa [#allocation3], 1 }
 0x19b   :  { %620 = vsyncpa [#allocation3 + $0x1], 1 }
 0x19c   :  { %621 = vsyncpa [#allocation4], 1 }
 0x19d   :  { %623 = vsyncpa [#allocation4 + $0x1], 1 }

</bundles_post_ra>
